<compile_context>
chip_gen: v7x
topology: tpu7x:2x2x1
jax: 0.10.0
libtpu: 0.0.40
codegen_flags: <defaults>
</compile_context>

<pallas_src>
import functools

import jax
import jax.numpy as jnp
from jax.experimental import pallas as pl
from jax.experimental.pallas import tpu as pltpu

_LANE = 128
_SUB_ROWS = 512              # rows of 128 lanes per inner accumulate step
_MAX_BLOCK_ROWS = 8192       # total rows per streamed block (~4 MiB f32/input)
_VMEM_LIMIT = 32 * 1024 * 1024


def _dice_kernel(pred_ref, target_ref, a_ref, b_ref, c_ref, *,
                 block_rows, sub_rows, tail_rows, total_chunks,
                 chunks_per_group, has_tail_mask, has_dead_chunks):
    """Accumulate sum(q*t), sum(q*q), sum(t*t) per sample into the output tiles.

    q = tanh(x/2) + 1 = 2*sigmoid(x); the 0.5 / 0.25 scale factors and the
    dice ratio itself are applied in the JAX wrapper.
    """
    g = pl.program_id(1)                 # parallel group along the reduction
    j = pl.program_id(2)                 # chunk index within the group
    chunk = g * chunks_per_group + j     # global chunk index

    # Output blocks are resident across the (last, "arbitrary") chunk axis and
    # act as the accumulators: zero them on the first chunk of each group.
    @pl.when(j == 0)
    def _init():
        a_ref[...] = jnp.zeros_like(a_ref)
        b_ref[...] = jnp.zeros_like(b_ref)
        c_ref[...] = jnp.zeros_like(c_ref)

    s = a_ref.shape[0]
    acc_rows = a_ref.shape[1]
    n_sub = block_rows // sub_rows

    def _accum_sub(r0, limit):
        # One (s, sub_rows, 128) sub-slab: bounded temps, pure VPU/EUP work.
        x = pred_ref[:, pl.ds(r0, sub_rows), :].astype(jnp.float32)
        t = target_ref[:, pl.ds(r0, sub_rows), :].astype(jnp.float32)
        q = jnp.tanh(0.5 * x) + 1.0      # 2*sigmoid(x), single EUP op
        if limit is not None:
            # Ragged tail: zero rows past the end (select also scrubs any
            # garbage, incl. NaN/Inf, read past the array end).
            rid = jax.lax.broadcasted_iota(jnp.int32, x.shape, 1)
            valid = rid < (limit - r0)
            q = jnp.where(valid, q, 0.0)
            t = jnp.where(valid, t, 0.0)

        if acc_rows == 8:
            # (s, R, 128) -> (s, R//8, 8, 128); reducing axis 1 is plain
            # vreg+vreg VPU adds into the lane-dense accumulator (no XLU).
            def part(v):
                return jnp.sum(v.reshape(s, sub_rows // 8, 8, _LANE), axis=1)
        else:
            # Tiny-input fallback (sub_rows not a multiple of 8).
            def part(v):
                return jnp.sum(v, axis=1, keepdims=True)

        a_ref[...] += part(q * t)        # ~ 2 * sum(pred * target)
        b_ref[...] += part(q * q)        # ~ 4 * sum(pred * pred)
        c_ref[...] += part(t * t)        #     sum(target * target)

    def _accum_chunk(limit):
        if n_sub == 1:
            _accum_sub(0, limit)
        else:
            def body(k, carry):
                _accum_sub(pl.multiple_of(k * sub_rows, sub_rows), limit)
                return carry
            jax.lax.fori_loop(0, n_sub, body, 0, unroll=True)

    if not has_tail_mask and not has_dead_chunks:
        # Common case: every chunk is full and valid -> no masking, no gating.
        _accum_chunk(None)
    else:
        full_bound = total_chunks - 1 if has_tail_mask else total_chunks

        @pl.when(chunk < full_bound)
        def _full():
            _accum_chunk(None)

        if has_tail_mask:
            @pl.when(chunk == total_chunks - 1)
            def _tail():
                _accum_chunk(tail_rows)
        # chunk >= total_chunks (dead chunk from uneven group split): no-op.


def _largest_divisor_leq(n, k):
    for s in range(min(n, k), 0, -1):
        if n % s == 0:
            return s
    return 1


def dice_loss_pallas(pred, target, weight=None, *, eps=1e-3, loss_weight=1.0,
                     reduction="mean", avg_factor=None):
    """Forward of DiceLoss(use_sigmoid=True, activate=True, naive_dice=False)."""
    n = pred.shape[0]
    d = 1
    for s in pred.shape[1:]:
        d *= s

    # Keep native dtypes in HBM (no host-side widening); cast in-kernel.
    pred2 = pred.reshape(n, d)
    target2 = target.reshape(n, d)

    if d % _LANE != 0:
        # Fallback (off the hot path): pad the flattened axis to a lane
        # multiple.  tanh(0.5 * -1e4) saturates to exactly -1.0 in f32, so
        # padded pred contributes exactly 0 to q*t / q*q; target pad 0 likewise.
        pad = _LANE - d % _LANE
        pred2 = jnp.pad(pred2, ((0, 0), (0, pad)), constant_values=-1e4)
        target2 = jnp.pad(target2, ((0, 0), (0, pad)), constant_values=0)
        d += pad

    rows = d // _LANE
    pred3 = pred2.reshape(n, rows, _LANE)
    target3 = target2.reshape(n, rows, _LANE)

    # --- tiling -----------------------------------------------------------
    # Prefer growing block_rows over packing samples: cap samples_per_block
    # at 4 and keep >= 2 sample blocks whenever n >= 2 (v7x load balance).
    s_cap = 1 if n < 2 else min(4, n // 2)
    samples_per_block = _largest_divisor_leq(n, s_cap)
    n_sample_blocks = n // samples_per_block

    if rows <= _SUB_ROWS:
        block_rows = rows
    else:
        cap_rows = max(_SUB_ROWS,
                       (_MAX_BLOCK_ROWS // samples_per_block)
                       // _SUB_ROWS * _SUB_ROWS)
        block_rows = min(cap_rows, (rows // _SUB_ROWS) * _SUB_ROWS)
    sub_rows = _SUB_ROWS if block_rows % _SUB_ROWS == 0 else block_rows
    acc_rows = 8 if sub_rows % 8 == 0 else 1

    total_chunks = (rows + block_rows - 1) // block_rows
    tail_rows = rows - (total_chunks - 1) * block_rows
    has_tail_mask = tail_rows != block_rows

    # Split the reduction into 2 parallel groups when the sample axis alone
    # cannot feed both v7x TensorCores.
    n_groups = 2 if (n_sample_blocks < 2 and total_chunks >= 2) else 1
    chunks_per_group = (total_chunks + n_groups - 1) // n_groups
    has_dead_chunks = chunks_per_group * n_groups > total_chunks

    grid = (n_sample_blocks, n_groups, chunks_per_group)

    def _in_map(i, g, j):
        chunk = g * chunks_per_group + j
        if has_dead_chunks:
            chunk = jnp.minimum(chunk, total_chunks - 1)   # clamp dead chunks
        return (i, chunk, 0)

    in_spec = pl.BlockSpec((samples_per_block, block_rows, _LANE), _in_map)
    # Output block index is constant over j -> resident accumulator block.
    out_spec = pl.BlockSpec((samples_per_block, None, acc_rows, _LANE),
                            lambda i, g, j: (i, g, 0, 0))
    out_sds = jax.ShapeDtypeStruct((n, n_groups, acc_rows, _LANE), jnp.float32)

    kernel = functools.partial(
        _dice_kernel, block_rows=block_rows, sub_rows=sub_rows,
        tail_rows=tail_rows, total_chunks=total_chunks,
        chunks_per_group=chunks_per_group, has_tail_mask=has_tail_mask,
        has_dead_chunks=has_dead_chunks)

    qt, qq, tt = pl.pallas_call(
        kernel,
        out_shape=(out_sds, out_sds, out_sds),
        grid_spec=pltpu.PrefetchScalarGridSpec(
            num_scalar_prefetch=0,
            grid=grid,
            in_specs=[in_spec, in_spec],
            out_specs=[out_spec, out_spec, out_spec],
        ),
        compiler_params=pltpu.CompilerParams(
            dimension_semantics=("parallel", "parallel", "arbitrary"),
            vmem_limit_bytes=_VMEM_LIMIT),
    )(pred3, target3)

    # --- finalize in JAX (tiny) --------------------------------------------
    a = 0.5 * jnp.sum(qt, axis=(1, 2, 3))          # sum(sigmoid(pred) * target)
    b = 0.25 * jnp.sum(qq, axis=(1, 2, 3)) + eps   # sum(sigmoid(pred)^2) + eps
    c = jnp.sum(tt, axis=(1, 2, 3)) + eps          # sum(target^2) + eps
    per_sample = 1.0 - 2.0 * a / (b + c)

    # weight_reduce_loss(loss, weight, reduction, avg_factor)
    if weight is not None:
        per_sample = per_sample * weight.astype(per_sample.dtype)
    if avg_factor is None:
        if reduction == "mean":
            loss = jnp.mean(per_sample)
        elif reduction == "sum":
            loss = jnp.sum(per_sample)
        else:  # "none"
            loss = per_sample
    else:
        if reduction == "mean":
            loss = jnp.sum(per_sample) / avg_factor
        elif reduction == "none":
            loss = per_sample
        else:
            raise ValueError("avg_factor can not be used with reduction='sum'")
    return loss_weight * loss


def _reference(pred, target, eps=1e-3, loss_weight=1.0):
    p = jax.nn.sigmoid(pred.reshape(pred.shape[0], -1).astype(jnp.float32))
    t = target.reshape(target.shape[0], -1).astype(jnp.float32)
    a = jnp.sum(p * t, axis=1)
    b = jnp.sum(p * p, axis=1) + eps
    c = jnp.sum(t * t, axis=1) + eps
    loss = 1.0 - 2.0 * a / (b + c)
    return loss_weight * jnp.mean(loss)


if __name__ == "__main__":
    key = jax.random.PRNGKey(0)
    k1, k2 = jax.random.split(key)
    # pred: (n, c, h, w) logits; target: same shape binary mask.
    pred = jax.random.normal(k1, (2, 4, 16, 16), dtype=jnp.float32)
    target = (jax.random.uniform(k2, (2, 4, 16, 16)) > 0.5).astype(jnp.float32)

    loss = dice_loss_pallas(pred, target)
    loss = jax.block_until_ready(loss)

    ref = _reference(pred, target)
    assert jnp.allclose(loss, ref, atol=1e-5, rtol=1e-5), (loss, ref)
    print("KERNEL_OK")
</pallas_src>

<mosaic_0001>
module attributes {stable_mosaic.version = 11 : i64} {
  func.func @_dice_kernel(%arg0: i32, %arg1: i32, %arg2: i32, %arg3: memref<1x8x128xf32, #tpu.memory_space<vmem>>, %arg4: memref<1x8x128xf32, #tpu.memory_space<vmem>>, %arg5: memref<1x1x8x128xf32, #tpu.memory_space<vmem>>, %arg6: memref<1x1x8x128xf32, #tpu.memory_space<vmem>>, %arg7: memref<1x1x8x128xf32, #tpu.memory_space<vmem>>) attributes {dimension_semantics = [#tpu.dimension_semantics<parallel>, #tpu.dimension_semantics<parallel>, #tpu.dimension_semantics<arbitrary>], iteration_bounds = array<i64: 2, 1, 1>, scalar_prefetch = 0 : i64, scratch_operands = 0 : i64, tpu.core_type = #tpu.core_type<tc>, window_params = [{transform_indices = @transform_0, window_bounds = array<i64: 1, 8, 128>}, {transform_indices = @transform_1, window_bounds = array<i64: 1, 8, 128>}, {transform_indices = @transform_2, window_bounds = array<i64: 1, 1, 8, 128>}, {transform_indices = @transform_3, window_bounds = array<i64: 1, 1, 8, 128>}, {transform_indices = @transform_4, window_bounds = array<i64: 1, 1, 8, 128>}]} {
    %c0_i32 = arith.constant 0 : i32
    %0 = arith.cmpi eq, %arg2, %c0_i32 : i32
    %1 = arith.extui %0 : i1 to i32
    %c0_i32_0 = arith.constant 0 : i32
    %2 = arith.cmpi ne, %1, %c0_i32_0 : i32
    scf.if %2 {
      %cst_34 = arith.constant 0.000000e+00 : f32
      %37 = vector.broadcast %cst_34 : f32 to vector<1x8x128xf32>
      %c0_35 = arith.constant 0 : index
      %c0_36 = arith.constant 0 : index
      %c0_37 = arith.constant 0 : index
      %c0_38 = arith.constant 0 : index
      %38 = vector.load %arg5[%c0_35, %c0_36, %c0_37, %c0_38] : memref<1x1x8x128xf32, #tpu.memory_space<vmem>>, vector<1x1x8x128xf32>
      %39 = vector.shape_cast %38 : vector<1x1x8x128xf32> to vector<1x8x128xf32>
      %40 = vector.shape_cast %37 : vector<1x8x128xf32> to vector<1x1x8x128xf32>
      tpu.vector_store %arg5[%c0_35, %c0_36, %c0_37, %c0_38], %40 {strides = array<i32>} : memref<1x1x8x128xf32, #tpu.memory_space<vmem>>, vector<1x1x8x128xf32>,
      %cst_39 = arith.constant 0.000000e+00 : f32
      %41 = vector.broadcast %cst_39 : f32 to vector<1x8x128xf32>
      %c0_40 = arith.constant 0 : index
      %c0_41 = arith.constant 0 : index
      %c0_42 = arith.constant 0 : index
      %c0_43 = arith.constant 0 : index
      %42 = vector.load %arg6[%c0_40, %c0_41, %c0_42, %c0_43] : memref<1x1x8x128xf32, #tpu.memory_space<vmem>>, vector<1x1x8x128xf32>
      %43 = vector.shape_cast %42 : vector<1x1x8x128xf32> to vector<1x8x128xf32>
      %44 = vector.shape_cast %41 : vector<1x8x128xf32> to vector<1x1x8x128xf32>
      tpu.vector_store %arg6[%c0_40, %c0_41, %c0_42, %c0_43], %44 {strides = array<i32>} : memref<1x1x8x128xf32, #tpu.memory_space<vmem>>, vector<1x1x8x128xf32>,
      %cst_44 = arith.constant 0.000000e+00 : f32
      %45 = vector.broadcast %cst_44 : f32 to vector<1x8x128xf32>
      %c0_45 = arith.constant 0 : index
      %c0_46 = arith.constant 0 : index
      %c0_47 = arith.constant 0 : index
      %c0_48 = arith.constant 0 : index
      %46 = vector.load %arg7[%c0_45, %c0_46, %c0_47, %c0_48] : memref<1x1x8x128xf32, #tpu.memory_space<vmem>>, vector<1x1x8x128xf32>
      %47 = vector.shape_cast %46 : vector<1x1x8x128xf32> to vector<1x8x128xf32>
      %48 = vector.shape_cast %45 : vector<1x8x128xf32> to vector<1x1x8x128xf32>
      tpu.vector_store %arg7[%c0_45, %c0_46, %c0_47, %c0_48], %48 {strides = array<i32>} : memref<1x1x8x128xf32, #tpu.memory_space<vmem>>, vector<1x1x8x128xf32>,
    } else {
    }
    %c0 = arith.constant 0 : index
    %c0_1 = arith.constant 0 : index
    %c0_2 = arith.constant 0 : index
    %3 = vector.load %arg3[%c0, %c0_1, %c0_2] : memref<1x8x128xf32, #tpu.memory_space<vmem>>, vector<1x8x128xf32>
    %c0_3 = arith.constant 0 : index
    %c0_4 = arith.constant 0 : index
    %c0_5 = arith.constant 0 : index
    %4 = vector.load %arg4[%c0_3, %c0_4, %c0_5] : memref<1x8x128xf32, #tpu.memory_space<vmem>>, vector<1x8x128xf32>
    %cst = arith.constant 5.000000e-01 : f32
    %5 = vector.broadcast %cst : f32 to vector<1x8x128xf32>
    %6 = arith.mulf %5, %3 : vector<1x8x128xf32>
    %7 = math.tanh %6 : vector<1x8x128xf32>
    %cst_6 = arith.constant 1.000000e+00 : f32
    %8 = vector.broadcast %cst_6 : f32 to vector<1x8x128xf32>
    %9 = arith.addf %7, %8 : vector<1x8x128xf32>
    %c0_7 = arith.constant 0 : index
    %c0_8 = arith.constant 0 : index
    %c0_9 = arith.constant 0 : index
    %c0_10 = arith.constant 0 : index
    %10 = vector.load %arg5[%c0_7, %c0_8, %c0_9, %c0_10] : memref<1x1x8x128xf32, #tpu.memory_space<vmem>>, vector<1x1x8x128xf32>
    %11 = vector.shape_cast %10 : vector<1x1x8x128xf32> to vector<1x8x128xf32>
    %12 = arith.mulf %9, %4 : vector<1x8x128xf32>
    %13 = vector.shape_cast %12 : vector<1x8x128xf32> to vector<1x1x8x128xf32>
    %cst_11 = arith.constant dense<0.000000e+00> : vector<1x8x128xf32>
    %14 = vector.multi_reduction <add>, %13, %cst_11 [1] : vector<1x1x8x128xf32> to vector<1x8x128xf32>
    %15 = arith.addf %11, %14 : vector<1x8x128xf32>
    %c0_12 = arith.constant 0 : index
    %c0_13 = arith.constant 0 : index
    %c0_14 = arith.constant 0 : index
    %c0_15 = arith.constant 0 : index
    %16 = vector.load %arg5[%c0_12, %c0_13, %c0_14, %c0_15] : memref<1x1x8x128xf32, #tpu.memory_space<vmem>>, vector<1x1x8x128xf32>
    %17 = vector.shape_cast %16 : vector<1x1x8x128xf32> to vector<1x8x128xf32>
    %18 = vector.shape_cast %15 : vector<1x8x128xf32> to vector<1x1x8x128xf32>
    tpu.vector_store %arg5[%c0_12, %c0_13, %c0_14, %c0_15], %18 {strides = array<i32>} : memref<1x1x8x128xf32, #tpu.memory_space<vmem>>, vector<1x1x8x128xf32>,
    %c0_16 = arith.constant 0 : index
    %c0_17 = arith.constant 0 : index
    %c0_18 = arith.constant 0 : index
    %c0_19 = arith.constant 0 : index
    %19 = vector.load %arg6[%c0_16, %c0_17, %c0_18, %c0_19] : memref<1x1x8x128xf32, #tpu.memory_space<vmem>>, vector<1x1x8x128xf32>
    %20 = vector.shape_cast %19 : vector<1x1x8x128xf32> to vector<1x8x128xf32>
    %21 = arith.mulf %9, %9 : vector<1x8x128xf32>
    %22 = vector.shape_cast %21 : vector<1x8x128xf32> to vector<1x1x8x128xf32>
    %cst_20 = arith.constant dense<0.000000e+00> : vector<1x8x128xf32>
    %23 = vector.multi_reduction <add>, %22, %cst_20 [1] : vector<1x1x8x128xf32> to vector<1x8x128xf32>
    %24 = arith.addf %20, %23 : vector<1x8x128xf32>
    %c0_21 = arith.constant 0 : index
    %c0_22 = arith.constant 0 : index
    %c0_23 = arith.constant 0 : index
    %c0_24 = arith.constant 0 : index
    %25 = vector.load %arg6[%c0_21, %c0_22, %c0_23, %c0_24] : memref<1x1x8x128xf32, #tpu.memory_space<vmem>>, vector<1x1x8x128xf32>
    %26 = vector.shape_cast %25 : vector<1x1x8x128xf32> to vector<1x8x128xf32>
    %27 = vector.shape_cast %24 : vector<1x8x128xf32> to vector<1x1x8x128xf32>
    tpu.vector_store %arg6[%c0_21, %c0_22, %c0_23, %c0_24], %27 {strides = array<i32>} : memref<1x1x8x128xf32, #tpu.memory_space<vmem>>, vector<1x1x8x128xf32>,
    %c0_25 = arith.constant 0 : index
    %c0_26 = arith.constant 0 : index
    %c0_27 = arith.constant 0 : index
    %c0_28 = arith.constant 0 : index
    %28 = vector.load %arg7[%c0_25, %c0_26, %c0_27, %c0_28] : memref<1x1x8x128xf32, #tpu.memory_space<vmem>>, vector<1x1x8x128xf32>
    %29 = vector.shape_cast %28 : vector<1x1x8x128xf32> to vector<1x8x128xf32>
    %30 = arith.mulf %4, %4 : vector<1x8x128xf32>
    %31 = vector.shape_cast %30 : vector<1x8x128xf32> to vector<1x1x8x128xf32>
    %cst_29 = arith.constant dense<0.000000e+00> : vector<1x8x128xf32>
    %32 = vector.multi_reduction <add>, %31, %cst_29 [1] : vector<1x1x8x128xf32> to vector<1x8x128xf32>
    %33 = arith.addf %29, %32 : vector<1x8x128xf32>
    %c0_30 = arith.constant 0 : index
    %c0_31 = arith.constant 0 : index
    %c0_32 = arith.constant 0 : index
    %c0_33 = arith.constant 0 : index
    %34 = vector.load %arg7[%c0_30, %c0_31, %c0_32, %c0_33] : memref<1x1x8x128xf32, #tpu.memory_space<vmem>>, vector<1x1x8x128xf32>
    %35 = vector.shape_cast %34 : vector<1x1x8x128xf32> to vector<1x8x128xf32>
    %36 = vector.shape_cast %33 : vector<1x8x128xf32> to vector<1x1x8x128xf32>
    tpu.vector_store %arg7[%c0_30, %c0_31, %c0_32, %c0_33], %36 {strides = array<i32>} : memref<1x1x8x128xf32, #tpu.memory_space<vmem>>, vector<1x1x8x128xf32>,
    return
  }
  func.func @transform_0(%arg0: i32, %arg1: i32, %arg2: i32) -> (i32, i32, i32) {
    %c1_i32 = arith.constant 1 : i32
    %0 = arith.muli %arg1, %c1_i32 : i32
    %1 = arith.addi %0, %arg2 : i32
    %c0_i32 = arith.constant 0 : i32
    %c0_i32_0 = arith.constant 0 : i32
    return %arg0, %1, %c0_i32 : i32, i32, i32
  }
  func.func @transform_1(%arg0: i32, %arg1: i32, %arg2: i32) -> (i32, i32, i32) {
    %c1_i32 = arith.constant 1 : i32
    %0 = arith.muli %arg1, %c1_i32 : i32
    %1 = arith.addi %0, %arg2 : i32
    %c0_i32 = arith.constant 0 : i32
    %c0_i32_0 = arith.constant 0 : i32
    return %arg0, %1, %c0_i32 : i32, i32, i32
  }
  func.func @transform_2(%arg0: i32, %arg1: i32, %arg2: i32) -> (i32, i32, i32, i32) {
    %c0_i32 = arith.constant 0 : i32
    %c0_i32_0 = arith.constant 0 : i32
    %c0_i32_1 = arith.constant 0 : i32
    return %arg0, %arg1, %c0_i32, %c0_i32_0 : i32, i32, i32, i32
  }
  func.func @transform_3(%arg0: i32, %arg1: i32, %arg2: i32) -> (i32, i32, i32, i32) {
    %c0_i32 = arith.constant 0 : i32
    %c0_i32_0 = arith.constant 0 : i32
    %c0_i32_1 = arith.constant 0 : i32
    return %arg0, %arg1, %c0_i32, %c0_i32_0 : i32, i32, i32, i32
  }
  func.func @transform_4(%arg0: i32, %arg1: i32, %arg2: i32) -> (i32, i32, i32, i32) {
    %c0_i32 = arith.constant 0 : i32
    %c0_i32_0 = arith.constant 0 : i32
    %c0_i32_1 = arith.constant 0 : i32
    return %arg0, %arg1, %c0_i32, %c0_i32_0 : i32, i32, i32, i32
  }
}

</mosaic_0001>

<bundles_post_ra>
// kernel: tpu_custom_call.1
= control target key start
LH: loop header
LB: loop body
LE: loop exit
PB: predicated region body
PF: predicated region fallthrough
CT: control target
= control target key end

     0   :  { %s1195_s0 = inlined_call_operand.hbm [shape: f32[2,8,128], index: 0, kind: input, shape index: {}]   ;;  %s1196_s1 = inlined_call_operand.hbm [shape: f32[2,8,128], index: 1, kind: input, shape index: {}]   ;;  %s1197_s2 = inlined_call_operand.hbm [shape: f32[2,1,8,128], index: 2, kind: output, shape index: {0}]   ;;  %s1198_s3 = inlined_call_operand.hbm [shape: f32[2,1,8,128], index: 3, kind: output, shape index: {1}]   ;;  %s1199_s4 = inlined_call_operand.hbm [shape: f32[2,1,8,128], index: 4, kind: output, shape index: {2}]  }
   0x1   :  { %1203 = sst [smem:[#allocation15_spill]] %s1195_s0 }
   0x2   :  { %10 = vsyncpa [#allocation3], 0 }
   0x3   :  { %12 = vsyncpa [#allocation3 + $0x1], 0 }
   0x4   :  { %13 = vsyncpa [#allocation6], 0 }
   0x5   :  { %15 = vsyncpa [#allocation6 + $0x1], 0 }
   0x6   :  { %16 = vsyncpa [#allocation4], 0 }
   0x7   :  { %18 = vsyncpa [#allocation4 + $0x1], 0 }
   0x8   :  { %19 = vsyncpa [#allocation9], 0 }
   0x9   :  { %21 = vsyncpa [#allocation9 + $0x1], 0  ;;  %s899_s15 = smov 0   ;;  %s901_s16 = smov 0  }
   0xa   :  { %s903_s17 = smov 0   ;;  %s905_s18 = smov 0  }
   0xb   :  { %s907_s19 = smov 0   ;;  %s909_s20 = smov 0  }
   0xc LB: > { %s930_s21 = sadd.s32 4294967295, %s867_s20   ;;  %s1200_s22 = sadd.s32 4294967294, %s867_s20   ;;  %s867_s20 = sphi %s909_s20, %s27_s20   ;;  %s863_s19 = sphi %s907_s19, %s1223_s19   ;;  %s859_s18 = sphi %s905_s18, %s1222_s18   ;;  %s855_s17 = sphi %s903_s17, %s1221_s17   ;;  %s851_s16 = sphi %s901_s16, %s1220_s16   ;;  %s847_s15 = sphi %s899_s15, %s1219_s15  }
   0xd   : > { %s46_s23 = sadd.s32 1, %s863_s19  ;;  %s57_s24 = sadd.s32 1, %s855_s17 }
   0xe   : > { %p48_p0 = scmp.ge.s32.totalorder %s46_s23, 2  ;;  %p64_p1 = scmp.ne.s32.totalorder %s855_s17, %s851_s16 }
   0xf   : > { %p65_p2 = scmp.eq.s32.totalorder %s867_s20, 0  ;;  %p70_p3 = scmp.ne.s32.totalorder %s851_s16, %s847_s15 }
  0x10   : > { %s1225_s23 = smov (%p48_p0, %s46_s23), 0  ;;  %p71_p5 = scmp.eq.s32.totalorder %s930_s21, 0 }
  0x11   : > { %p942_p4 = por %p65_p2, %p64_p1  ;;  %s52_s26 = ssub.s32 %s863_s19, %s1225_s23 }
  0x12   : > { %p126_p6 = scmp.eq.s32.totalorder %s930_s21, 1  ;;  %p55_p7 = scmp.eq.s32.totalorder %s52_s26, 0 }
  0x13   : > { %p950_p8 = por %p71_p5, %p70_p3  ;;  %p132_p10 = scmp.eq.s32.totalorder %s1200_s22, 1 }
  0x14   : > { %p954_p9 = por %p126_p6, %p64_p1  ;;  %p608_p13 = scmp.lt.s32.totalorder %s867_s20, 2 }
  0x15   : > { %s1205_s27 = scalar_select %p950_p8, 1, 0 }
  0x16   : > { %s1206_s28 = scalar_select %p954_p9, 1, 0 }
  0x17   : > { %s961_s29 = scalar_select %p55_p7, %s855_s17, %s57_s24  }
  0x18   : > { %p963_p11 = por %p132_p10, %p70_p3  ;;  %s970_s5 = sand.u32 1, %s855_s17  }
  0x19   : > { %s563_s6 = sshll.u32 %s970_s5, 3  ;;  %s564_s7 = sshll.u32 %s863_s19, 7 }
  0x1a   : > { %s1207_s30 = scalar_select %p963_p11, 1, 0 }
  0x1b   : > { %s1208_s0 = sld [smem:[#allocation15_spill]]  ;;  %s212_s11 = scalar_lea.vmem [#allocation2], %s563_s6 }
  0x1c   : > { %s221_s12 = sshll.u32 %s212_s11, 4  ;;  %p987_p0 = pnand %p608_p13, %p942_p4  ;;  %s983_s12 = int_to_ptr.vmem [resolvable:$true] %s221_s12 }
  0x1d   : > { %s209_s14 = scalar_lea.sflag [#allocation3], %s970_s5 }
  0x1e   : > { %p663_p5 = pneg %p987_p0 }
  0x21   : > { %s979_s10 = scalar_lea.hbm %s1208_s0, %s564_s7  ;;  %s666_s25 = scalar_lea.hbm %s1208_s0, 256 }
  0x22   : > { %s661_s24 = scalar_lea.hbm %s979_s10, 128  ;;  %p667_p4 = scmp.lt.u32.totalorder %s979_s10, %s1208_s0 }
  0x23   : > { %p662_p3 = scmp.ne.s32.totalorder %s979_s10, %s661_s24  ;;  %p668_p10 = scmp.lt.u32.totalorder %s666_s25, %s661_s24 }
  0x24   : > { %p670_p12 = scmp.lt.u32.totalorder %s661_s24, %s979_s10 }
  0x25   : > { %p664_p6 = pnand %p663_p5, %p662_p3  ;;  %p669_p13 = por %p668_p10, %p667_p4 }
  0x27   : > { %p665_p7 = pneg %p664_p6  ;;  %p671_p1 = por %p670_p12, %p669_p13 }
  0x29   : > { %p672_p2 = pnand %p671_p1, %p665_p7 }
  0x2b   : > { %675 = shalt.err (!%p672_p2)
}
  0x2c   : > { %s676_s22 = scalar_lea.vmem %s983_s12, 128  ;;  %s869_s26 = smov [#allocation2]  }
  0x2d   : > { %p677_p3 = scmp.ne.s32.totalorder %s983_s12, %s676_s22  ;;  %s681_s8 = sshll.u32 %s869_s26, 4  ;;  %s682_s8 = int_to_ptr.vmem [resolvable:$false] %s681_s8 }
  0x2e   : > { %s683_s9 = scalar_lea.vmem %s682_s8, 256  ;;  %p684_p9 = scmp.lt.s32.totalorder %s983_s12, %s682_s8 }
  0x2f   : > { %p679_p6 = pnand %p677_p3, %p663_p5  ;;  %p685_p4 = scmp.lt.s32.totalorder %s683_s9, %s676_s22 }
  0x31   : > { %p680_p11 = pneg %p679_p6  ;;  %p686_p10 = por %p685_p4, %p684_p9 }
  0x33   : > { %p687_p12 = pnand %p686_p10, %p680_p11 }
  0x35   : > { %690 = shalt.err (!%p687_p12)
}
  0x36   : > { %594 = dma.hbm_to_vmem [thread:$0]  (!%p987_p0), %s979_s10, 128, %s983_s12, %s209_s14  }
  0x37   : > { %p1210_p1 = scmp.lt.s32.totalorder %s867_s20, 3  ;;  %p1211_p2 = scmp.ge.s32.totalorder %s867_s20, 1 }
  0x38   : > { %s1032_s11 = scalar_lea.hbm %s1196_s1, %s564_s7  ;;  %s232_s26 = scalar_lea.vmem [#allocation5], %s563_s6 }
  0x39   : > { %p1023_p7 = pnand %p1211_p2, %p1210_p1  ;;  %s241_s8 = sshll.u32 %s232_s26, 4  ;;  %s242_s8 = int_to_ptr.vmem [resolvable:$true] %s241_s8 }
  0x3a   : > { %s229_s10 = scalar_lea.sflag [#allocation6], %s970_s5  ;;  %s691_s12 = scalar_lea.hbm %s1032_s11, 128 }
  0x3b   : > { %s1212_s24 = scalar_select %p1023_p7, 1, 0 }
  0x3c   : > { %p692_p9 = scmp.ne.s32.totalorder %s1032_s11, %s691_s12  ;;  %s696_s7 = scalar_lea.hbm %s1196_s1, 256 }
  0x3d   : > { %p697_p3 = scmp.lt.u32.totalorder %s1032_s11, %s1196_s1  ;;  %p698_p6 = scmp.lt.u32.totalorder %s696_s7, %s691_s12 }
  0x3e   : > { %p694_p11 = pnand %p692_p9, %p663_p5  ;;  %p700_p10 = scmp.lt.u32.totalorder %s691_s12, %s1032_s11 }
  0x3f   : > { %p699_p4 = por %p698_p6, %p697_p3 }
  0x40   : > { %p695_p13 = pneg %p694_p11 }
  0x41   : > { %p701_p12 = por %p700_p10, %p699_p4 }
  0x43   : > { %p702_p1 = pnand %p701_p12, %p695_p13 }
  0x45   : > { %705 = shalt.err (!%p702_p1)
}
  0x46   : > { %s706_s5 = scalar_lea.vmem %s242_s8, 128  ;;  %s870_s6 = smov [#allocation5]  }
  0x47   : > { %p707_p2 = scmp.ne.s32.totalorder %s242_s8, %s706_s5  ;;  %s711_s26 = sshll.u32 %s870_s6, 4  ;;  %s712_s26 = int_to_ptr.vmem [resolvable:$false] %s711_s26 }
  0x48   : > { %s713_s14 = scalar_lea.vmem %s712_s26, 256  ;;  %p714_p8 = scmp.lt.s32.totalorder %s242_s8, %s712_s26 }
  0x49   : > { %p709_p9 = pnand %p707_p2, %p663_p5  ;;  %p715_p7 = scmp.lt.s32.totalorder %s713_s14, %s706_s5 }
  0x4b   : > { %p710_p11 = pneg %p709_p9  ;;  %p716_p3 = por %p715_p7, %p714_p8 }
  0x4d   : > { %p717_p6 = pnand %p716_p3, %p710_p11 }
  0x4f   : > { %720 = shalt.err (!%p717_p6)
}
  0x50   : > { %597 = dma.hbm_to_vmem [thread:$0]  (!%p987_p0), %s1032_s11, 128, %s242_s8, %s229_s10  }
  0x51   : > { %p1213_p13 = scmp.ne.s32.totalorder %s1212_s24, 0 }
  0x52   : > { %s1059_s12 = sand.u32 (!%p1213_p13), 1, %s851_s16   ;;  %p1214_p8 = scmp.ne.s32.totalorder (!%p1213_p13), %s1205_s27, 0 }
  0x53   : > { %250 = sbr.rel (%p1213_p13) target bundleno = 170 (0xaa), region = 28  ;;  %s1062_s9 = sshll.u32 (!%p1213_p13), %s1059_s12, 3 }
  0x54   : > { %s253_s7 = scalar_lea.sflag (!%p1213_p13), [#allocation3], %s1059_s12  ;;  %s256_s22 = scalar_lea.vmem (!%p1213_p13), [#allocation2], %s1062_s9 }
  0x5a   : > { %830 = dma.done.wait (%p1214_p8), %s253_s7, 128  }
  0x5b   : > { %832 = vsyncadd (%p1214_p8), %s253_s7, 4294967168  ;;  %s262_s13 = scalar_lea.sflag [#allocation6], %s1059_s12  ;;  %s265_s24 = scalar_lea.vmem [#allocation5], %s1062_s9 }
  0x5c   : > { %834 = dma.done.wait (%p1214_p8), %s262_s13, 128  }
  0x5d   : > { %836 = vsyncadd (%p1214_p8), %s262_s13, 4294967168  ;;  %v314_v0 = vld [vmem:[%s256_s22] sm:$0xff]  ;;  %v315_v1 = vld [vmem:[%s265_s24] sm:$0xff]  ;;  %s304_s11 = scalar_lea.vmem [#allocation10], %s1062_s9  ;;  %s339_s8 = sand.u32 1, %s930_s21  }
  0x5e   : > { %v316_v2 = vmul.f32 0.5, %v314_v0  ;;  %v330_v3 = vmul.f32 %v315_v1, %v315_v1  ;;  %s576_s10 = sshll.u32 %s859_s18, 7  ;;  %s297_s25 = scalar_lea.vmem [#allocation8], %s1062_s9 }
  0x5f   : > { %s373_s5 = sshll.u32 %s297_s25, 4  ;;  %s387_s27 = sshll.u32 %s304_s11, 4  ;;  %s1086_s5 = int_to_ptr.vmem [resolvable:$true] %s373_s5  ;;  %s1095_s27 = int_to_ptr.vmem [resolvable:$true] %s387_s27 }
  0x60   : > { %659 = vtanh.f32 %v316_v2  ;;  %333 = vst [vmem:[%s304_s11] sm:$0xff] %v330_v3  ;;  %s290_s6 = scalar_lea.vmem [#allocation7], %s1062_s9  ;;  %s1084_s22 = scalar_lea.hbm %s1198_s3, %s576_s10 }
  0x61   : > { %s359_s26 = sshll.u32 %s290_s6, 4  ;;  %s1091_s18 = scalar_lea.hbm %s1197_s2, %s576_s10  ;;  %s1093_s26 = int_to_ptr.vmem [resolvable:$true] %s359_s26 }
  0x62   : > { %s1100_s11 = scalar_lea.hbm %s1199_s4, %s576_s10  ;;  %s1102_s14 = scalar_lea.sflag [#allocation9], %s339_s8 }
  0x63   : > { %s721_s7 = scalar_lea.vmem %s1086_s5, 128  ;;  %p1215_p5 = scmp.ne.s32.totalorder %s1206_s28, 0 }
  0x64   : > { %p722_p0 = scmp.ne.s32.totalorder %s1086_s5, %s721_s7  ;;  %s871_s13 = smov [#allocation8]  }
  0x65   : > { %s725_s24 = sshll.u32 %s871_s13, 4  ;;  %s726_s24 = int_to_ptr.vmem [resolvable:$false] %s725_s24 }
  0x66   : > { %p723_p7 = pnand %p722_p0, %p1215_p5  ;;  %s727_s0 = scalar_lea.vmem %s726_s24, 256 }
  0x67   : > { %p728_p10 = scmp.lt.s32.totalorder %s1086_s5, %s726_s24  ;;  %p729_p12 = scmp.lt.s32.totalorder %s727_s0, %s721_s7 }
  0x68   : > { %p724_p4 = pneg %p723_p7 }
  0x69   : > { %p730_p1 = por %p729_p12, %p728_p10 }
  0x6a   : > { %v660_v4 = vpop.eup %659 }
  0x6b   : > { %v318_v5 = vadd.f32 1.0, %v660_v4  ;;  %p731_p2 = pnand %p730_p1, %p724_p4 }
  0x6d   : > { %v325_v6 = vmul.f32 %v318_v5, %v318_v5  ;;  %v320_v7 = vmul.f32 %v318_v5, %v315_v1 }
  0x6f   : > { %328 = vst [vmem:[%s297_s25] sm:$0xff] %v325_v6  ;;  %323 = vst [vmem:[%s290_s6] sm:$0xff] %v320_v7 }
  0x70   : > { %734 = shalt.err (!%p731_p2)
}
  0x71   : > { %s735_s8 = scalar_lea.hbm %s1084_s22, 128  ;;  %s739_s6 = scalar_lea.hbm %s1198_s3, 256 }
  0x72   : > { %p736_p9 = scmp.ne.s32.totalorder %s1084_s22, %s735_s8  ;;  %p740_p6 = scmp.lt.u32.totalorder %s1084_s22, %s1198_s3 }
  0x73   : > { %p741_p13 = scmp.lt.u32.totalorder %s739_s6, %s735_s8  ;;  %p743_p0 = scmp.lt.u32.totalorder %s735_s8, %s1084_s22 }
  0x74   : > { %p737_p11 = pnand %p736_p9, %p1215_p5 }
  0x75   : > { %p742_p8 = por %p741_p13, %p740_p6 }
  0x76   : > { %p738_p3 = pneg %p737_p11 }
  0x77   : > { %p744_p7 = por %p743_p0, %p742_p8 }
  0x79   : > { %p745_p4 = pnand %p744_p7, %p738_p3 }
  0x7b   : > { %748 = shalt.err (!%p745_p4)
}
  0x7c   : > { %586 = dma.vmem_to_hbm [thread:$0]  (%p1215_p5), %s1086_s5, 128, %s1084_s22, %s1102_s14  }
  0x7d   : > { %s335_s0 = scalar_lea.sflag [#allocation4], %s1059_s12  ;;  %s749_s7 = scalar_lea.vmem %s1093_s26, 128 }
  0x7e   : > { %p750_p10 = scmp.ne.s32.totalorder %s1093_s26, %s749_s7  ;;  %s872_s13 = smov [#allocation7]  }
  0x7f   : > { %s753_s24 = sshll.u32 %s872_s13, 4  ;;  %s754_s24 = int_to_ptr.vmem [resolvable:$false] %s753_s24 }
  0x80   : > { %p751_p12 = pnand %p750_p10, %p1215_p5  ;;  %s755_s8 = scalar_lea.vmem %s754_s24, 256 }
  0x81   : > { %p756_p2 = scmp.lt.s32.totalorder %s1093_s26, %s754_s24  ;;  %p757_p9 = scmp.lt.s32.totalorder %s755_s8, %s749_s7 }
  0x82   : > { %p752_p1 = pneg %p751_p12 }
  0x83   : > { %p758_p11 = por %p757_p9, %p756_p2 }
  0x85   : > { %p759_p3 = pnand %p758_p11, %p752_p1 }
  0x87   : > { %762 = shalt.err (!%p759_p3)
}
  0x88   : > { %s763_s12 = scalar_lea.hbm %s1091_s18, 128  ;;  %s767_s10 = scalar_lea.hbm %s1197_s2, 256 }
  0x89   : > { %p764_p6 = scmp.ne.s32.totalorder %s1091_s18, %s763_s12  ;;  %p768_p0 = scmp.lt.u32.totalorder %s1091_s18, %s1197_s2 }
  0x8a   : > { %p769_p7 = scmp.lt.u32.totalorder %s767_s10, %s763_s12  ;;  %p771_p10 = scmp.lt.u32.totalorder %s763_s12, %s1091_s18 }
  0x8b   : > { %p765_p13 = pnand %p764_p6, %p1215_p5 }
  0x8c   : > { %p770_p4 = por %p769_p7, %p768_p0 }
  0x8d   : > { %p766_p8 = pneg %p765_p13 }
  0x8e   : > { %p772_p12 = por %p771_p10, %p770_p4 }
  0x90   : > { %p773_p1 = pnand %p772_p12, %p766_p8 }
  0x92   : > { %776 = shalt.err (!%p773_p1)
}
  0x93   : > { %585 = dma.vmem_to_hbm [thread:$0]  (%p1215_p5), %s1093_s26, 128, %s1091_s18, %s335_s0  }
  0x94   : > { %s777_s21 = scalar_lea.vmem %s1095_s27, 128  ;;  %s873_s9 = smov [#allocation10]  }
  0x95   : > { %p778_p2 = scmp.ne.s32.totalorder %s1095_s27, %s777_s21  ;;  %s781_s7 = sshll.u32 %s873_s9, 4  ;;  %s782_s7 = int_to_ptr.vmem [resolvable:$false] %s781_s7 }
  0x96   : > { %s783_s13 = scalar_lea.vmem %s782_s7, 256  ;;  %p784_p3 = scmp.lt.s32.totalorder %s1095_s27, %s782_s7 }
  0x97   : > { %p779_p9 = pnand %p778_p2, %p1215_p5  ;;  %p785_p6 = scmp.lt.s32.totalorder %s783_s13, %s777_s21 }
  0x99   : > { %p780_p11 = pneg %p779_p9  ;;  %p786_p13 = por %p785_p6, %p784_p3 }
  0x9b   : > { %p787_p8 = pnand %p786_p13, %p780_p11 }
  0x9d   : > { %790 = shalt.err (!%p787_p8)
}
  0x9e   : > { %s791_s26 = scalar_lea.hbm %s1100_s11, 128  ;;  %s795_s24 = scalar_lea.hbm %s1199_s4, 256 }
  0x9f   : > { %p792_p0 = scmp.ne.s32.totalorder %s1100_s11, %s791_s26  ;;  %p796_p10 = scmp.lt.u32.totalorder %s1100_s11, %s1199_s4 }
  0xa0   : > { %p797_p12 = scmp.lt.u32.totalorder %s795_s24, %s791_s26  ;;  %p799_p2 = scmp.lt.u32.totalorder %s791_s26, %s1100_s11 }
  0xa1   : > { %p793_p7 = pnand %p792_p0, %p1215_p5 }
  0xa2   : > { %p798_p1 = por %p797_p12, %p796_p10 }
  0xa3   : > { %p794_p4 = pneg %p793_p7 }
  0xa4   : > { %p800_p9 = por %p799_p2, %p798_p1 }
  0xa6   : > { %p801_p11 = pnand %p800_p9, %p794_p4 }
  0xa8   : > { %804 = shalt.err (!%p801_p11)
}
  0xa9   : > { %587 = dma.vmem_to_hbm [thread:$0]  (%p1215_p5), %s1095_s27, 128, %s1100_s11, %s1102_s14  }
  0xaa PF: > { %s399_s5 = sand.u32 1, %s847_s15   ;;  %p1216_p3 = scmp.ne.s32.totalorder %s1207_s30, 0 }
  0xab   : > { %p1217_p6 = scmp.ge.s32.totalorder %s867_s20, 2  ;;  %s400_s22 = scalar_lea.sflag [#allocation4], %s399_s5 }
  0xad   : > { %p599_p13 = pnand %p1217_p6, %p1216_p3 }
  0xaf   : > { %838 = dma.done.wait (!%p599_p13), %s400_s22, 128  }
  0xb0   : > { %840 = vsyncadd (!%p599_p13), %s400_s22, 4294967168  ;;  %s1218_s10 = sadd.s32 4294967294, %s867_s20  }
  0xb1   : > { %s408_s25 = sand.u32 1, %s1218_s10  }
  0xb2   : > { %s409_s6 = scalar_lea.sflag [#allocation9], %s408_s25 }
  0xb3   : > { %842 = dma.done.wait (!%p599_p13), %s409_s6, 256  }
  0xb4   : > { %844 = vsyncadd (!%p599_p13), %s409_s6, 4294967040  ;;  %s27_s20 = sadd.s32 1, %s867_s20   ;;  %s1219_s15 = smov %s851_s16 }
  0xb5   : > { %p24_p5 = scmp.ge.s32.totalorder %s27_s20, 4   ;;  %s1220_s16 = smov %s855_s17 }
  0xb6   : > { %s1221_s17 = smov %s961_s29  ;;  %s1222_s18 = smov %s863_s19 }
  0xb7   : > { %s1223_s19 = smov %s1225_s23  ;;  %26 = sbr.rel (!%p24_p5) target bundleno = 12 (0xc), region = 122 }
  0xbe   :  { %423 = vsyncpa [#allocation3], 1 }
  0xbf   :  { %425 = vsyncpa [#allocation3 + $0x1], 1 }
  0xc0   :  { %426 = vsyncpa [#allocation6], 1 }
  0xc1   :  { %428 = vsyncpa [#allocation6 + $0x1], 1 }
  0xc2   :  { %429 = vsyncpa [#allocation4], 1 }
  0xc3   :  { %431 = vsyncpa [#allocation4 + $0x1], 1 }
  0xc4   :  { %432 = vsyncpa [#allocation9], 1 }
  0xc5   :  { %434 = vsyncpa [#allocation9 + $0x1], 1 }

</bundles_post_ra>
